<compile_context>
chip_gen: v6e
topology: v6e:2x2x1
jax: 0.10.0
libtpu: 0.0.40
codegen_flags: <defaults>
</compile_context>

<pallas_src>
import jax
import jax.numpy as jnp
from jax.experimental import pallas as pl
from jax.experimental.pallas import tpu as pltpu

_LANE = 128      # TPU lane width (last dim)
_SUBLANE = 8     # f32 sublane width (second-to-last dim)
_K_TILE = 512    # K (n_feature) tile used when n_feature is large
_B_MAX = 512     # max batch tile (rows)


def _round_up(x, m):
    return ((x + m - 1) // m) * m


def _choose_padded_out(n_output):
    # Prefer a 256-multiple (full MXU width on v6e/v7x), then a 128-multiple,
    # but only when padding overhead <= 25%.  Tiny outputs stay unpadded:
    # masked stores cost less than doubled output bytes + a post-slice pass.
    for m in (256, _LANE):
        cand = _round_up(n_output, m)
        if (cand - n_output) * 4 <= n_output:
            return cand
    return n_output


def _vmem_capacity_bytes():
    try:
        info = pltpu.get_tpu_info()
        cap = getattr(info, "vmem_capacity_bytes", None)
        if cap:
            return int(cap)
    except Exception:
        pass
    return 64 * 1024 * 1024   # conservative: v7x per-TensorCore VMEM


def _pick_tb(Bp, cap):
    # Largest multiple of 8 that exactly divides Bp (no wasted padded rows).
    cap = max(_SUBLANE, min(cap, Bp))
    best = _SUBLANE
    t = _SUBLANE
    while t <= cap:
        if Bp % t == 0:
            best = t
        t += _SUBLANE
    return best


def _bspec(shape, index_map, buffers=2):
    # Optional deeper pipelining (sweepable); falls back if unsupported.
    if buffers > 2:
        try:
            return pl.BlockSpec(shape, index_map, pipeline_mode=pl.Buffered(buffers))
        except TypeError:
            pass
    return pl.BlockSpec(shape, index_map)


def prepare_decoder_params(weight, bias, param_dtype=jnp.float32):
    """One-time parameter prep (do at model init, NOT per forward call).

    weight: (n_output, n_feature)  -- PyTorch nn.Linear layout
    bias:   (n_output,)

    Returns:
      wt: (Fp, Op) transposed weight; Op is (adaptively) lane-padded, Fp is
          padded to a _K_TILE multiple only when n_feature is large.
      b2: (1, Op) f32 bias, zero-padded.
    Use param_dtype=jnp.bfloat16 on v6e/v7x to halve weight/activation HBM
    bytes (f32 accumulation is preserved in-kernel).
    """
    n_output, n_feature = weight.shape
    Op = _choose_padded_out(n_output)
    Fp = n_feature if n_feature <= _K_TILE else _round_up(n_feature, _K_TILE)

    wt = jnp.zeros((Fp, Op), param_dtype)
    wt = wt.at[:n_feature, :n_output].set(weight.T.astype(param_dtype))
    b2 = jnp.zeros((1, Op), jnp.float32)
    b2 = b2.at[0, :n_output].set(bias.astype(jnp.float32))
    return wt, b2


def _linear_bias_relu_kernel(x_ref, wt_ref, b_ref, o_ref):
    # Full-K block: o = relu(x @ w + b).  No scratch, no control flow.
    o_ref[...] = jnp.maximum(
        jnp.dot(x_ref[...], wt_ref[...], preferred_element_type=jnp.float32)
        + b_ref[...], 0.0).astype(o_ref.dtype)


def _linear_bias_relu_acc_kernel(x_ref, wt_ref, b_ref, o_ref, acc_ref):
    # K-tiled path: grid = (batch blocks, output-col blocks, K blocks)
    k = pl.program_id(2)

    @pl.when(k == 0)
    def _init():
        acc_ref[...] = jnp.zeros_like(acc_ref)

    acc_ref[...] += jnp.dot(x_ref[...], wt_ref[...],
                            preferred_element_type=jnp.float32)

    @pl.when(k == pl.num_programs(2) - 1)
    def _finalize():
        o_ref[...] = jnp.maximum(acc_ref[...] + b_ref[...],
                                 0.0).astype(o_ref.dtype)


def decoder_forward(x, wt, b2, n_output, *, tb=None, allow_resident=True,
                    k_tile=_K_TILE, k_buffers=2):
    """x: (B, n_feature); wt/b2 from prepare_decoder_params; returns (B, n_output)."""
    B, F = x.shape
    Fp, Op = wt.shape
    assert b2.shape == (1, Op)
    assert F <= Fp and n_output <= Op
    out_dtype = x.dtype

    x_it = jnp.dtype(wt.dtype).itemsize      # x is cast to the weight dtype
    w_it = x_it
    o_it = jnp.dtype(out_dtype).itemsize

    # ---- batch tiling: pad B only to a multiple of 8, pick a tile that
    # divides Bp exactly; prefer >= 2 batch blocks (both v7x TensorCores).
    if tb is not None:
        tb = max(_SUBLANE, _round_up(tb, _SUBLANE))
        Bp = _round_up(B, tb)
    else:
        Bp = _round_up(B, _SUBLANE)
        cap = min(_B_MAX, Bp if Bp < 2 * _SUBLANE else Bp // 2)
        tb = _pick_tb(Bp, cap)

    # ---- pad activations (zeros contribute nothing) and cast to weight dtype.
    if (Bp, Fp) != (B, F):
        x = jnp.pad(x, ((0, Bp - B), (0, Fp - F)))
    if x.dtype != wt.dtype:
        x = x.astype(wt.dtype)

    # ---- VMEM budgets (v7x has 64 MiB/TC; v5e/v6e have 128 MiB).
    vmem_cap = _vmem_capacity_bytes()
    if vmem_cap >= 128 * 1024 * 1024:
        resident_budget, vmem_cap_limit = 40 << 20, 48 << 20
    else:
        resident_budget, vmem_cap_limit = 22 << 20, 32 << 20

    # Conservative estimate (double-buffers everything, incl. the weight).
    resident_est = (2 * tb * Fp * x_it + 2 * Fp * Op * w_it
                    + 2 * Op * 4 + 2 * tb * Op * o_it)
    use_resident = allow_resident and resident_est <= resident_budget

    flops = 2 * Bp * Fp * Op

    if use_resident:
        # -------- weight-resident fast path: batch-only grid, no K axis ----
        grid = (Bp // tb,)
        cost = pl.CostEstimate(
            flops=flops, transcendentals=0,
            bytes_accessed=Bp * Fp * x_it + Fp * Op * w_it + Op * 4
                           + Bp * Op * o_it)
        vmem_limit = int(min(max(resident_est + (4 << 20), 16 << 20),
                             vmem_cap_limit))
        y = pl.pallas_call(
            _linear_bias_relu_kernel,
            out_shape=jax.ShapeDtypeStruct((Bp, Op), out_dtype),
            grid_spec=pltpu.PrefetchScalarGridSpec(
                num_scalar_prefetch=0,
                grid=grid,
                in_specs=[
                    pl.BlockSpec((tb, Fp), lambda i: (i, 0)),   # x batch tile
                    pl.BlockSpec((Fp, Op), lambda i: (0, 0)),   # whole weight
                    pl.BlockSpec((1, Op), lambda i: (0, 0)),    # bias
                ],
                out_specs=pl.BlockSpec((tb, Op), lambda i: (i, 0)),
            ),
            compiler_params=pltpu.CompilerParams(
                dimension_semantics=("parallel",),
                vmem_limit_bytes=vmem_limit,
            ),
            cost_estimate=cost,
        )(x, wt, b2)
    else:
        # -------- tiled path (large weights) --------
        tn = Op
        for cand in (512, 256, _LANE):   # largest MXU-friendly tile dividing Op
            if Op % cand == 0:
                tn = cand
                break
        if Fp <= k_tile or Fp % k_tile != 0:
            tk = Fp
        else:
            tk = k_tile
        nk = Fp // tk

        tile_est = (2 * tb * tk * x_it + 2 * tk * tn * w_it + 2 * tn * 4
                    + 2 * tb * tn * o_it + tb * tn * 4)
        vmem_limit = int(min(max(2 * tile_est, 16 << 20), vmem_cap_limit))
        cost = pl.CostEstimate(
            flops=flops, transcendentals=0,
            bytes_accessed=(Bp // tb) * Fp * Op * w_it + Bp * Fp * x_it
                           + Op * 4 + Bp * Op * o_it)

        if nk == 1:
            # nk==1 specialization: no accumulator scratch, no pl.when.
            y = pl.pallas_call(
                _linear_bias_relu_kernel,
                out_shape=jax.ShapeDtypeStruct((Bp, Op), out_dtype),
                grid_spec=pltpu.PrefetchScalarGridSpec(
                    num_scalar_prefetch=0,
                    grid=(Bp // tb, Op // tn),
                    in_specs=[
                        pl.BlockSpec((tb, tk), lambda i, j: (i, 0)),
                        pl.BlockSpec((tk, tn), lambda i, j: (0, j)),
                        pl.BlockSpec((1, tn), lambda i, j: (0, j)),
                    ],
                    out_specs=pl.BlockSpec((tb, tn), lambda i, j: (i, j)),
                ),
                compiler_params=pltpu.CompilerParams(
                    dimension_semantics=("parallel", "parallel"),
                    vmem_limit_bytes=vmem_limit,
                ),
                cost_estimate=cost,
            )(x, wt, b2)
        else:
            y = pl.pallas_call(
                _linear_bias_relu_acc_kernel,
                out_shape=jax.ShapeDtypeStruct((Bp, Op), out_dtype),
                grid_spec=pltpu.PrefetchScalarGridSpec(
                    num_scalar_prefetch=0,
                    grid=(Bp // tb, Op // tn, nk),
                    in_specs=[
                        _bspec((tb, tk), lambda i, j, k: (i, k), k_buffers),
                        _bspec((tk, tn), lambda i, j, k: (k, j), k_buffers),
                        pl.BlockSpec((1, tn), lambda i, j, k: (0, j)),
                    ],
                    out_specs=pl.BlockSpec((tb, tn), lambda i, j, k: (i, j)),
                    scratch_shapes=[pltpu.VMEM((tb, tn), jnp.float32)],
                ),
                compiler_params=pltpu.CompilerParams(
                    dimension_semantics=("parallel", "parallel", "arbitrary"),
                    vmem_limit_bytes=vmem_limit,
                ),
                cost_estimate=cost,
            )(x, wt, b2)

    if (Bp, Op) != (B, n_output):
        y = y[:B, :n_output]
    return y


def decoder_reference(x, weight, bias):
    return jnp.maximum(x @ weight.T + bias, 0.0)


if __name__ == "__main__":
    key = jax.random.PRNGKey(0)
    kx, kw, kb = jax.random.split(key, 3)

    # --- Case 1: small module-like shapes -> weight-resident single-block path.
    B, n_feature, n_output = 8, 32, 64
    x = jax.random.normal(kx, (B, n_feature), dtype=jnp.float32)
    weight = jax.random.normal(kw, (n_output, n_feature), dtype=jnp.float32) * 0.1
    bias = jax.random.normal(kb, (n_output,), dtype=jnp.float32) * 0.1

    wt, b2 = prepare_decoder_params(weight, bias)          # one-time init
    y = jax.block_until_ready(decoder_forward(x, wt, b2, n_output))
    y_ref = decoder_reference(x, weight, bias)
    assert y.shape == (B, n_output)
    assert jnp.allclose(y, y_ref, atol=1e-5, rtol=1e-5), "case1 mismatch"

    # --- Case 2: force the tiled paths (nk==1 and nk>1) for coverage.
    k2 = jax.random.PRNGKey(2)
    ka, kb2, kc = jax.random.split(k2, 3)
    B2, F2, O2 = 16, 256, 256
    x2 = jax.random.normal(ka, (B2, F2), dtype=jnp.float32)
    w2 = jax.random.normal(kb2, (O2, F2), dtype=jnp.float32) * 0.05
    bi2 = jax.random.normal(kc, (O2,), dtype=jnp.float32) * 0.05
    wt2, b22 = prepare_decoder_params(w2, bi2)
    ref2 = decoder_reference(x2, w2, bi2)
    y2a = jax.block_until_ready(
        decoder_forward(x2, wt2, b22, O2, allow_resident=False))            # nk == 1
    y2b = jax.block_until_ready(
        decoder_forward(x2, wt2, b22, O2, allow_resident=False, k_tile=128))  # nk == 2
    assert jnp.allclose(y2a, ref2, atol=1e-3, rtol=1e-3), "case2a mismatch"
    assert jnp.allclose(y2b, ref2, atol=1e-3, rtol=1e-3), "case2b mismatch"

    # --- Case 3: bf16 weights (bandwidth-saving option on v6e/v7x).
    wt_bf, b2_bf = prepare_decoder_params(weight, bias, param_dtype=jnp.bfloat16)
    y_bf = jax.block_until_ready(decoder_forward(x, wt_bf, b2_bf, n_output))
    assert jnp.allclose(y_bf.astype(jnp.float32), y_ref, atol=5e-2, rtol=5e-2), \
        "case3 mismatch"

    print("KERNEL_OK")
</pallas_src>

<mosaic_0001>
module attributes {stable_mosaic.version = 11 : i64} {
  func.func @_linear_bias_relu_kernel(%arg0: i32, %arg1: memref<8x32xf32, #tpu.memory_space<vmem>>, %arg2: memref<32x64xf32, #tpu.memory_space<vmem>>, %arg3: memref<1x64xf32, #tpu.memory_space<vmem>>, %arg4: memref<8x64xf32, #tpu.memory_space<vmem>>) attributes {dimension_semantics = [#tpu.dimension_semantics<parallel>], iteration_bounds = array<i64: 1>, scalar_prefetch = 0 : i64, scratch_operands = 0 : i64, tpu.core_type = #tpu.core_type<tc>, window_params = [{transform_indices = @transform_0, window_bounds = array<i64: 8, 32>}, {pipeline_mode = #tpu.pipeline_mode<synchronous>, transform_indices = @transform_1, window_bounds = array<i64: 32, 64>}, {pipeline_mode = #tpu.pipeline_mode<synchronous>, transform_indices = @transform_2, window_bounds = array<i64: 1, 64>}, {transform_indices = @transform_3, window_bounds = array<i64: 8, 64>}]} {
    %c0 = arith.constant 0 : index
    %c0_0 = arith.constant 0 : index
    %0 = vector.load %arg1[%c0, %c0_0] : memref<8x32xf32, #tpu.memory_space<vmem>>, vector<8x32xf32>
    %c0_1 = arith.constant 0 : index
    %c0_2 = arith.constant 0 : index
    %1 = vector.load %arg2[%c0_1, %c0_2] : memref<32x64xf32, #tpu.memory_space<vmem>>, vector<32x64xf32>
    %cst = arith.constant dense<0.000000e+00> : vector<8x64xf32>
    %2 = tpu.matmul %0, %1, %cst {dimension_numbers = #tpu.dot_dimension_numbers<[1], [0], [0], [1], [0, 0, 1, 1], [], []>} : vector<8x32xf32>, vector<32x64xf32>, vector<8x64xf32> -> vector<8x64xf32>
    %c0_3 = arith.constant 0 : index
    %c0_4 = arith.constant 0 : index
    %3 = vector.load %arg3[%c0_3, %c0_4] : memref<1x64xf32, #tpu.memory_space<vmem>>, vector<1x64xf32>
    %4 = vector.broadcast %3 : vector<1x64xf32> to vector<8x64xf32>
    %5 = arith.addf %2, %4 : vector<8x64xf32>
    %cst_5 = arith.constant 0.000000e+00 : f32
    %6 = vector.broadcast %cst_5 : f32 to vector<8x64xf32>
    %7 = arith.maximumf %5, %6 : vector<8x64xf32>
    %c0_6 = arith.constant 0 : index
    %c0_7 = arith.constant 0 : index
    %8 = vector.load %arg4[%c0_6, %c0_7] : memref<8x64xf32, #tpu.memory_space<vmem>>, vector<8x64xf32>
    tpu.vector_store %arg4[%c0_6, %c0_7], %7 {strides = array<i32>} : memref<8x64xf32, #tpu.memory_space<vmem>>, vector<8x64xf32>,
    return
  }
  func.func @transform_0(%arg0: i32) -> (i32, i32) {
    %c0_i32 = arith.constant 0 : i32
    %c0_i32_0 = arith.constant 0 : i32
    return %arg0, %c0_i32 : i32, i32
  }
  func.func @transform_1(%arg0: i32) -> (i32, i32) {
    %c0_i32 = arith.constant 0 : i32
    %c0_i32_0 = arith.constant 0 : i32
    %c0_i32_1 = arith.constant 0 : i32
    return %c0_i32, %c0_i32_0 : i32, i32
  }
  func.func @transform_2(%arg0: i32) -> (i32, i32) {
    %c0_i32 = arith.constant 0 : i32
    %c0_i32_0 = arith.constant 0 : i32
    %c0_i32_1 = arith.constant 0 : i32
    return %c0_i32, %c0_i32_0 : i32, i32
  }
  func.func @transform_3(%arg0: i32) -> (i32, i32) {
    %c0_i32 = arith.constant 0 : i32
    %c0_i32_0 = arith.constant 0 : i32
    return %arg0, %c0_i32 : i32, i32
  }
}

</mosaic_0001>

<bundles_post_ra>
// kernel: tpu_custom_call.1
= control target key start
LH: loop header
LB: loop body
LE: loop exit
PB: predicated region body
PF: predicated region fallthrough
CT: control target
= control target key end

     0   :  { %8 = vsyncpa [#allocation3], 0  ;;  %s276_s0 = inlined_call_operand.hbm [shape: f32[8,32], index: 0, kind: input, shape index: {}]   ;;  %s277_s1 = inlined_call_operand.hbm [shape: f32[32,64], index: 1, kind: input, shape index: {}]   ;;  %s278_s2 = inlined_call_operand.vmem [shape: f32[1,64], index: 2, kind: input, shape index: {}]   ;;  %s279_s3 = inlined_call_operand.hbm [shape: f32[8,64], index: 3, kind: output, shape index: {}]  }
   0x1   :  { %9 = vsyncpa [#allocation6], 0 }
   0x2   :  { %10 = vsyncpa [#allocation4], 0  ;;  %s237_s12 = smov [#allocation2]   ;;  %s238_s14 = smov [#allocation5]  }
   0x3   :  { %s17_s13 = sshll.u32 %s237_s12, 4  ;;  %s26_s15 = sshll.u32 %s238_s14, 4  ;;  %s18_s13 = int_to_ptr.vmem [resolvable:$true] %s17_s13  ;;  %s27_s15 = int_to_ptr.vmem [resolvable:$true] %s26_s15 }
   0x4   :  { %s179_s16 = scalar_lea.vmem %s18_s13, 128  ;;  %p184_p1 = scmp.lt.s32.totalorder %s18_s13, %s18_s13 }
   0x5   :  { %p180_p0 = scmp.ne.s32.totalorder %s18_s13, %s179_s16  ;;  %p185_p2 = scmp.lt.s32.totalorder %s179_s16, %s179_s16 }
   0x7   :  { %p186_p3 = por %p185_p2, %p184_p1 }
   0x9   :  { %p187_p4 = pnand %p186_p3, %p180_p0 }
   0xb   :  { %190 = shalt.err (!%p187_p4)
}
   0xc   :  { %20 = dma.hbm_to_vmem [thread:$0]  %s276_s0, 128, %s18_s13, [#allocation3]  }
   0xd   :  { %s199_s19 = scalar_lea.vmem %s27_s15, 512  ;;  %p204_p6 = scmp.lt.s32.totalorder %s27_s15, %s27_s15 }
   0xe   :  { %p200_p5 = scmp.ne.s32.totalorder %s27_s15, %s199_s19  ;;  %p205_p7 = scmp.lt.s32.totalorder %s199_s19, %s199_s19 }
  0x10   :  { %p206_p8 = por %p205_p7, %p204_p6 }
  0x12   :  { %p207_p9 = pnand %p206_p8, %p200_p5 }
  0x14   :  { %210 = shalt.err (!%p207_p9)
}
  0x15   :  { %s239_s20 = smov 128   ;;  %s240_s21 = smov 8  }
  0x16   :  { %32 = dma.hbm_to_vmem [thread:$0]  %s277_s1, 512, %s27_s15, [#allocation6], %s239_s20, %s239_s20, %s240_s21  }
  0x17   :  { %231 = dma.done.wait [#allocation3], 128  }
  0x18   :  { %232 = vsyncadd [#allocation3], 4294967168 }
  0x19   :  { %233 = dma.done.wait [#allocation6], 512  }
  0x1a   :  { %234 = vsyncadd [#allocation6], 4294966784  ;;  %v241_v0 = vmov 0.0   ;;  %vm242_vm0 = vmmov 0   ;;  %v45_v1 = vld [vmem:[#allocation5 + $0x18] sm:$0xff]  ;;  %v44_v2 = vld [vmem:[#allocation5 + $0x10] sm:$0xff] }
  0x1b   :  { %153 = vmatprep.subr.mxu0 %v241_v0  ;;  %161 = vmatprep.mubr.msk.f32.mxu0 %vm242_vm0, %v241_v0  ;;  %v43_v3 = vld [vmem:[#allocation5 + $0x8] sm:$0xff]  ;;  %v42_v4 = vld [vmem:[#allocation5] sm:$0xff]  ;;  %v41_v5 = vld [vmem:[#allocation2] sm:$0xff]  ;;  %vm53_vm1 = vcmask 261120   ;;  %s243_s24 = smov [#allocation7]   ;;  %vm128_vm2 = vcmask 523264  }
  0x1c   :  { %154 = vmatpush3.msra.mxu0 %v45_v1  ;;  %v146_v6 = vld [vmem:[%s278_s2] ss:$0 sm:$0xff]  ;;  %s136_s25 = sshll.u32 %s243_s24, 4  ;;  %s137_s25 = int_to_ptr.vmem [resolvable:$true] %s136_s25 }
  0x1d   :  { %155 = vmatprep.subr.mxu0 %v241_v0  ;;  %s211_s26 = scalar_lea.vmem %s137_s25, 128  ;;  %p216_p11 = scmp.lt.s32.totalorder %s137_s25, %s137_s25 }
  0x1e   :  { %156 = vmatpush3.msra.mxu0 %v44_v2  ;;  %p212_p10 = scmp.ne.s32.totalorder %s137_s25, %s211_s26  ;;  %p217_p12 = scmp.lt.s32.totalorder %s211_s26, %s211_s26 }
  0x1f   :  { %157 = vmatprep.subr.mxu0 %v241_v0 }
  0x20   :  { %158 = vmatpush3.msra.mxu0 %v43_v3  ;;  %p218_p13 = por %p217_p12, %p216_p11 }
  0x21   :  { %159 = vmatprep.subr.mxu0 %v241_v0 }
  0x22   :  { %160 = vmatpush3.msra.mxu0 %v42_v4  ;;  %p219_p0 = pnand %p218_p13, %p212_p10 }
  0x23   :  { %162 = vmatmul.mubr.msk.f32.vlgmr.msra.gmra.mxu0 %vm53_vm1, %v41_v5 }
  0xe3   :  { %v123_v7 = vpop.f32.mrf.mxu0 }
  0xe4   :  { %v124_v8 = vadd.f32 %v146_v6, %v123_v7 }
  0xe5   :  { %v163_v9 = vpop.f32.mrf.mxu0 }
  0xe6   :  { %v127_v10 = vmax.f32 %v124_v8, 0.0 }
  0xe8   :  { %129 = vst.msk [vmem:[#allocation7] sm:$0xff] %vm128_vm2, %v127_v10 }
  0xe9   :  { %222 = shalt.err (!%p219_p0)
}
  0xea   :  { %139 = dma.vmem_to_hbm [thread:$0]  %s137_s25, 128, %s279_s3, [#allocation4]  }
  0xeb   :  { %235 = dma.done.wait [#allocation4], 128  }
  0xec   :  { %236 = vsyncadd [#allocation4], 4294967168 }
  0xed   :  { %143 = vsyncpa [#allocation3], 1 }
  0xee   :  { %144 = vsyncpa [#allocation6], 1 }
  0xef   :  { %145 = vsyncpa [#allocation4], 1 }

</bundles_post_ra>
